<compile_context>
chip_gen: v5e
topology: v5e:2x2
jax: 0.10.0
libtpu: 0.0.40
codegen_flags: <defaults>
</compile_context>

<pallas_src>
import functools
import math

import numpy as np
import jax
import jax.numpy as jnp
from jax.experimental import pallas as pl
from jax.experimental.pallas import tpu as pltpu

EPS = 1e-5
NEG_SLOPE = 0.01

# --------------------------------------------------------------------------
# Tiling / compiler-parameter knobs (re-derive _DW_TILE_H / _VMEM_LIMIT for v7x)
# --------------------------------------------------------------------------
_VMEM_LIMIT = 64 * 1024 * 1024     # scoped VMEM ceiling; actual use stays far below
_MM_TILE_M = 512                   # matmul row tile
_EW_TILE_M = 1024                  # elementwise row tile
_DW_TILE_H = 16                    # output-row band per depthwise halo step
_GAP_TILE = 2048                   # H*W chunk per global-avg-pool step

_ANY = getattr(pl, "ANY", getattr(pltpu, "ANY", None))
_CPCls = getattr(pltpu, "CompilerParams", getattr(pltpu, "TPUCompilerParams", None))


def _cparams(sem, vmem=_VMEM_LIMIT):
    if _CPCls is None:
        return None
    return _CPCls(dimension_semantics=sem, vmem_limit_bytes=vmem)


def _choose_tile(total, target, align=1):
    """Largest tile <= target that divides `total` and is align-aligned;
    falls back to the full extent (always a legal BlockSpec)."""
    if total <= target:
        return total
    t = (target // align) * align
    while t >= align:
        if total % t == 0:
            return t
        t -= align
    return total


# ----------------------------------------------------------------------------
# Parameter generation (deterministic, mirrors _initialize_weights)
# ----------------------------------------------------------------------------
class ParamGen:
    def __init__(self, seed=42):
        self._key = jax.random.PRNGKey(seed)

    def _next(self):
        self._key, k = jax.random.split(self._key)
        return k

    def conv(self, kh, kw, cin, cout):
        # kaiming_normal_(a=0.01, mode='fan_in', nonlinearity='leaky_relu'), HWIO layout
        fan_in = kh * kw * cin
        std = math.sqrt(2.0 / (1.0 + NEG_SLOPE ** 2) / fan_in)
        return std * jax.random.normal(self._next(), (kh, kw, cin, cout), jnp.float32)

    def dwconv(self, kh, kw, c):
        fan_in = kh * kw  # depthwise: in_channels / groups == 1
        std = math.sqrt(2.0 / (1.0 + NEG_SLOPE ** 2) / fan_in)
        return std * jax.random.normal(self._next(), (kh, kw, c), jnp.float32)

    def bn(self, c):
        # init: weight ~ N(1, 0.0256), bias = 0 ; eval fold with running stats (0, 1)
        gamma = 1.0 + 0.0256 * jax.random.normal(self._next(), (c,), jnp.float32)
        beta = jnp.zeros((c,), jnp.float32)
        scale = gamma / jnp.sqrt(1.0 + EPS)
        shift = beta
        return scale, shift


# ----------------------------------------------------------------------------
# In-kernel helpers
# ----------------------------------------------------------------------------
def _act(y, act):
    if act == "leaky":
        return jnp.where(y > 0, y, NEG_SLOPE * y)
    if act == "relu":
        return jnp.maximum(y, 0.0)
    if act == "sigmoid":
        return jax.nn.sigmoid(y)
    return y


# ----------------------------------------------------------------------------
# Pallas kernels
# ----------------------------------------------------------------------------
def _mm_affine_kernel(x_ref, w_ref, s_ref, b_ref, o_ref, *, act):
    y = jnp.dot(x_ref[...], w_ref[...], preferred_element_type=jnp.float32)
    o_ref[...] = _act(y * s_ref[...] + b_ref[...], act)


def _dw_taps_kernel(t_ref, w_ref, s_ref, b_ref, o_ref, *, act):
    y = jnp.sum(t_ref[...] * w_ref[...], axis=0)            # (tm, C)
    o_ref[...] = _act(y * s_ref[...] + b_ref[...], act)


def _max_taps_kernel(t_ref, o_ref):
    o_ref[...] = jnp.max(t_ref[...], axis=0)


def _dw_halo_kernel(xpad_ref, w_ref, s_ref, b_ref, o_ref, xbuf, sem,
                    *, kh, kw, dil, tile_oh, wo, act):
    """Stride-1 depthwise conv: DMA a halo row-band from HBM, sum taps in-register."""
    n = pl.program_id(0)
    band = pl.program_id(1)
    rows_in = tile_oh + (kh - 1) * dil
    cp = pltpu.make_async_copy(
        xpad_ref.at[pl.ds(n, 1), pl.ds(band * tile_oh, rows_in)], xbuf, sem)
    cp.start()
    cp.wait()
    wfull = w_ref[...]                                        # (kh*kw, 1, C)
    acc = None
    for ih in range(kh):
        for iw in range(kw):
            sl = xbuf[:, pl.ds(ih * dil, tile_oh), pl.ds(iw * dil, wo), :]
            term = sl * wfull[ih * kw + iw]
            acc = term if acc is None else acc + term
    o_ref[...] = _act(acc * s_ref[...] + b_ref[...], act)


def _pbcsa_kernel(xpad_ref, ws_ref, ch_ref, o_ref, xbuf, sem,
                  *, dil, tile_oh, wo, use_res):
    """Fused SCSE-style gate: spatial gate (dilated 3x3 -> sigmoid) computed as a
    tap-sum over the halo band, combined with the channel gate and residual."""
    n = pl.program_id(0)
    band = pl.program_id(1)
    rows_in = tile_oh + 2 * dil
    cp = pltpu.make_async_copy(
        xpad_ref.at[pl.ds(n, 1), pl.ds(band * tile_oh, rows_in)], xbuf, sem)
    cp.start()
    cp.wait()
    wfull = ws_ref[...]                                       # (9, 1, C)
    acc = None
    for ih in range(3):
        for iw in range(3):
            sl = xbuf[:, pl.ds(ih * dil, tile_oh), pl.ds(iw * dil, wo), :]
            term = sl * wfull[ih * 3 + iw]
            acc = term if acc is None else acc + term
    sp = jax.nn.sigmoid(jnp.sum(acc, axis=-1, keepdims=True))  # (1, tile_oh, wo, 1)
    xc = xbuf[:, pl.ds(dil, tile_oh), pl.ds(dil, wo), :]        # un-padded x band
    ch = ch_ref[...]                                            # (1, 1, C)
    y = xc * ch + xc * sp
    if use_res:
        y = y + xc
    o_ref[...] = y


def _gap_kernel(x_ref, o_ref, *, inv_count):
    @pl.when(pl.program_id(0) == 0)
    def _():
        o_ref[...] = jnp.zeros_like(o_ref)
    o_ref[...] = o_ref[...] + jnp.sum(x_ref[...], axis=1, keepdims=True)

    @pl.when(pl.program_id(0) == pl.num_programs(0) - 1)
    def _():
        o_ref[...] = o_ref[...] * inv_count


def _affine_act_kernel(x_ref, s_ref, b_ref, o_ref, *, act):
    o_ref[...] = _act(x_ref[...] * s_ref[...] + b_ref[...], act)


def _unsharp_kernel(x_ref, blur_ref, s_ref, b_ref, o_ref, *, amount):
    x = x_ref[...]
    y = x + amount * (x - blur_ref[...])
    o_ref[...] = _act(y * s_ref[...] + b_ref[...], "leaky")


# ----------------------------------------------------------------------------
# Pallas wrappers (jitted so identical-shape invocations share a compile)
# ----------------------------------------------------------------------------
@functools.partial(jax.jit, static_argnames=("act",))
def matmul_affine(x, w, scale, shift, act="none"):
    M, K = x.shape
    N = w.shape[1]
    tm = _choose_tile(M, _MM_TILE_M, 8)
    return pl.pallas_call(
        functools.partial(_mm_affine_kernel, act=act),
        grid=(M // tm,),
        in_specs=[pl.BlockSpec((tm, K), lambda i: (i, 0)),
                  pl.BlockSpec((K, N), lambda i: (0, 0)),   # weight stays hot in VMEM
                  pl.BlockSpec((1, N), lambda i: (0, 0)),
                  pl.BlockSpec((1, N), lambda i: (0, 0))],
        out_specs=pl.BlockSpec((tm, N), lambda i: (i, 0)),
        out_shape=jax.ShapeDtypeStruct((M, N), jnp.float32),
        compiler_params=_cparams(("parallel",)),
    )(x, w, scale.reshape(1, N), shift.reshape(1, N))


def _extract_taps(x, ksize, stride, dilation, padding, pad_value=0.0):
    """(kh*kw, N, Ho, Wo, C) shifted views of padded x (plain-JAX glue).
    Only used for the few stride-2 ops; stride-1 convs use the halo kernel."""
    N, H, W, C = x.shape
    kh, kw = ksize
    sh, sw = stride
    dh, dw = dilation
    ph, pw = padding
    xp = jnp.pad(x, ((0, 0), (ph, ph), (pw, pw), (0, 0)), constant_values=pad_value)
    Ho = (H + 2 * ph - dh * (kh - 1) - 1) // sh + 1
    Wo = (W + 2 * pw - dw * (kw - 1) - 1) // sw + 1
    taps = []
    for ih in range(kh):
        for iw in range(kw):
            sl = xp[:, ih * dh: ih * dh + sh * (Ho - 1) + 1: sh,
                       iw * dw: iw * dw + sw * (Wo - 1) + 1: sw, :]
            taps.append(sl)
    return jnp.stack(taps, axis=0), Ho, Wo


def _dw_halo(x, w_dw, scale, shift, dilation, act):
    """Stride-1 depthwise conv with in-kernel taps (manual halo DMA)."""
    N, H, W, C = x.shape
    kh, kw, _ = w_dw.shape
    ph, pw = dilation * (kh // 2), dilation * (kw // 2)
    xpad = jnp.pad(x, ((0, 0), (ph, ph), (pw, pw), (0, 0)))
    Wp = W + 2 * pw
    Ho, Wo = H, W
    tile_oh = _choose_tile(Ho, _DW_TILE_H, 1)
    rows_in = tile_oh + (kh - 1) * dilation
    nb = Ho // tile_oh
    T = kh * kw
    return pl.pallas_call(
        functools.partial(_dw_halo_kernel, kh=kh, kw=kw, dil=dilation,
                          tile_oh=tile_oh, wo=Wo, act=act),
        grid=(N, nb),
        in_specs=[pl.BlockSpec(memory_space=_ANY),
                  pl.BlockSpec((T, 1, C), lambda n, b: (0, 0, 0)),
                  pl.BlockSpec((1, C), lambda n, b: (0, 0)),
                  pl.BlockSpec((1, C), lambda n, b: (0, 0))],
        out_specs=pl.BlockSpec((1, tile_oh, Wo, C), lambda n, b: (n, b, 0, 0)),
        out_shape=jax.ShapeDtypeStruct((N, Ho, Wo, C), jnp.float32),
        scratch_shapes=[pltpu.VMEM((1, rows_in, Wp, C), jnp.float32),
                        pltpu.SemaphoreType.DMA],
        compiler_params=_cparams(("parallel", "parallel")),
    )(xpad, w_dw.reshape(T, 1, C), scale.reshape(1, C), shift.reshape(1, C))


def _dw_taps(x, w_dw, scale, shift, stride, dilation, act):
    """Strided depthwise conv via tap stack (only used by the two stride-2 blocks)."""
    kh, kw, C = w_dw.shape
    pad = (dilation * (kh // 2), dilation * (kw // 2))
    taps, Ho, Wo = _extract_taps(x, (kh, kw), (stride, stride),
                                 (dilation, dilation), pad)
    N = x.shape[0]
    T = kh * kw
    M = N * Ho * Wo
    tm = _choose_tile(M, _EW_TILE_M, 8)
    out = pl.pallas_call(
        functools.partial(_dw_taps_kernel, act=act),
        grid=(M // tm,),
        in_specs=[pl.BlockSpec((T, tm, C), lambda i: (0, i, 0)),
                  pl.BlockSpec((T, 1, C), lambda i: (0, 0, 0)),
                  pl.BlockSpec((1, C), lambda i: (0, 0)),
                  pl.BlockSpec((1, C), lambda i: (0, 0))],
        out_specs=pl.BlockSpec((tm, C), lambda i: (i, 0)),
        out_shape=jax.ShapeDtypeStruct((M, C), jnp.float32),
        compiler_params=_cparams(("parallel",)),
    )(taps.reshape(T, M, C), w_dw.reshape(T, 1, C),
      scale.reshape(1, C), shift.reshape(1, C))
    return out.reshape(N, Ho, Wo, C)


@functools.partial(jax.jit, static_argnames=("stride", "dilation", "act"))
def depthwise_conv_bn(x, w_dw, scale, shift, stride=1, dilation=1, act="none"):
    if stride == 1:
        return _dw_halo(x, w_dw, scale, shift, dilation, act)
    return _dw_taps(x, w_dw, scale, shift, stride, dilation, act)


@functools.partial(jax.jit, static_argnames=("stride", "dilation", "act"))
def conv_im2col_bn(x, w_hwio, scale, shift, stride=1, dilation=1, act="none"):
    # Only used for the tiny 3-channel stem conv (K = 27).
    kh, kw, cin, cout = w_hwio.shape
    pad = (dilation * (kh // 2), dilation * (kw // 2))
    taps, Ho, Wo = _extract_taps(x, (kh, kw), (stride, stride), (dilation, dilation), pad)
    N = x.shape[0]
    T = kh * kw
    patches = jnp.transpose(taps, (1, 2, 3, 0, 4)).reshape(N * Ho * Wo, T * cin)
    wmat = w_hwio.reshape(T * cin, cout)
    y = matmul_affine(patches, wmat, scale, shift, act)
    return y.reshape(N, Ho, Wo, cout)


@functools.partial(jax.jit, static_argnames=("act",))
def conv1x1_bn(x, w, scale, shift, act="none"):
    N, H, W, Cin = x.shape
    y = matmul_affine(x.reshape(N * H * W, Cin), w, scale, shift, act)
    return y.reshape(N, H, W, -1)


@jax.jit
def maxpool_3x3_s2(x):
    taps, Ho, Wo = _extract_taps(x, (3, 3), (2, 2), (1, 1), (1, 1), pad_value=-jnp.inf)
    N, _, _, C = x.shape
    M = N * Ho * Wo
    tm = _choose_tile(M, _EW_TILE_M, 8)
    out = pl.pallas_call(
        _max_taps_kernel,
        grid=(M // tm,),
        in_specs=[pl.BlockSpec((9, tm, C), lambda i: (0, i, 0))],
        out_specs=pl.BlockSpec((tm, C), lambda i: (i, 0)),
        out_shape=jax.ShapeDtypeStruct((M, C), jnp.float32),
        compiler_params=_cparams(("parallel",)),
    )(taps.reshape(9, M, C))
    return out.reshape(N, Ho, Wo, C)


@jax.jit
def global_avg_pool(x):
    N, H, W, C = x.shape
    HW = H * W
    t_hw = _choose_tile(HW, _GAP_TILE, 8)
    out = pl.pallas_call(
        functools.partial(_gap_kernel, inv_count=1.0 / HW),
        grid=(HW // t_hw,),
        in_specs=[pl.BlockSpec((N, t_hw, C), lambda i: (0, i, 0))],
        out_specs=pl.BlockSpec((N, 1, C), lambda i: (0, 0, 0)),
        out_shape=jax.ShapeDtypeStruct((N, 1, C), jnp.float32),
        compiler_params=_cparams(("arbitrary",)),
    )(x.reshape(N, HW, C))
    return out.reshape(N, 1, 1, C)


@functools.partial(jax.jit, static_argnames=("act",))
def affine_act(x, scale, shift, act="leaky"):
    N, H, W, C = x.shape
    M = N * H * W
    tm = _choose_tile(M, _EW_TILE_M, 8)
    out = pl.pallas_call(
        functools.partial(_affine_act_kernel, act=act),
        grid=(M // tm,),
        in_specs=[pl.BlockSpec((tm, C), lambda i: (i, 0)),
                  pl.BlockSpec((1, C), lambda i: (0, 0)),
                  pl.BlockSpec((1, C), lambda i: (0, 0))],
        out_specs=pl.BlockSpec((tm, C), lambda i: (i, 0)),
        out_shape=jax.ShapeDtypeStruct((M, C), jnp.float32),
        compiler_params=_cparams(("parallel",)),
    )(x.reshape(M, C), scale.reshape(1, C), shift.reshape(1, C))
    return out.reshape(N, H, W, C)


@functools.partial(jax.jit, static_argnames=("amount",))
def unsharp_combine(x, blur, scale, shift, amount=1.0):
    N, H, W, C = x.shape
    M = N * H * W
    tm = _choose_tile(M, _EW_TILE_M, 8)
    out = pl.pallas_call(
        functools.partial(_unsharp_kernel, amount=amount),
        grid=(M // tm,),
        in_specs=[pl.BlockSpec((tm, C), lambda i: (i, 0)),
                  pl.BlockSpec((tm, C), lambda i: (i, 0)),
                  pl.BlockSpec((1, C), lambda i: (0, 0)),
                  pl.BlockSpec((1, C), lambda i: (0, 0))],
        out_specs=pl.BlockSpec((tm, C), lambda i: (i, 0)),
        out_shape=jax.ShapeDtypeStruct((M, C), jnp.float32),
        compiler_params=_cparams(("parallel",)),
    )(x.reshape(M, C), blur.reshape(M, C), scale.reshape(1, C), shift.reshape(1, C))
    return out.reshape(N, H, W, C)


@functools.partial(jax.jit, static_argnames=("dilation", "use_res"))
def pbcsa_fused(x, ws, ch_gate, dilation=4, use_res=True):
    """Fused spatial-gate conv + channel gate + residual combine."""
    N, H, W, C = x.shape
    d = dilation
    xpad = jnp.pad(x, ((0, 0), (d, d), (d, d), (0, 0)))
    Wp = W + 2 * d
    tile_oh = _choose_tile(H, _DW_TILE_H, 1)
    rows_in = tile_oh + 2 * d
    nb = H // tile_oh
    return pl.pallas_call(
        functools.partial(_pbcsa_kernel, dil=d, tile_oh=tile_oh, wo=W, use_res=use_res),
        grid=(N, nb),
        in_specs=[pl.BlockSpec(memory_space=_ANY),
                  pl.BlockSpec((9, 1, C), lambda n, b: (0, 0, 0)),
                  pl.BlockSpec((1, 1, C), lambda n, b: (n, 0, 0))],
        out_specs=pl.BlockSpec((1, tile_oh, W, C), lambda n, b: (n, b, 0, 0)),
        out_shape=jax.ShapeDtypeStruct((N, H, W, C), jnp.float32),
        scratch_shapes=[pltpu.VMEM((1, rows_in, Wp, C), jnp.float32),
                        pltpu.SemaphoreType.DMA],
        compiler_params=_cparams(("parallel", "parallel")),
    )(xpad, ws, ch_gate)


# ----------------------------------------------------------------------------
# Plain-JAX glue
# ----------------------------------------------------------------------------
def channel_shuffle(x, groups=2):
    # TODO(synk): could be folded into the next 1x1-conv weights (channel permutation).
    N, H, W, C = x.shape
    return x.reshape(N, H, W, groups, C // groups).transpose(0, 1, 2, 4, 3).reshape(N, H, W, C)


def bilinear_upsample(x, out_h, out_w):
    # align_corners=True bilinear resize (data-movement glue, not the hot path)
    N, H, W, C = x.shape
    if H == 1 and W == 1:
        return jnp.broadcast_to(x, (N, out_h, out_w, C))

    def coords(in_s, out_s):
        if out_s == 1:
            z = jnp.zeros((1,), jnp.float32)
            return z, jnp.zeros((1,), jnp.int32), jnp.zeros((1,), jnp.int32)
        pos = jnp.arange(out_s, dtype=jnp.float32) * ((in_s - 1) / (out_s - 1))
        i0 = jnp.clip(jnp.floor(pos).astype(jnp.int32), 0, in_s - 1)
        i1 = jnp.minimum(i0 + 1, in_s - 1)
        return pos - i0.astype(jnp.float32), i0, i1

    fh, h0, h1 = coords(H, out_h)
    fw, w0, w1 = coords(W, out_w)
    x00 = x[:, h0][:, :, w0]
    x01 = x[:, h0][:, :, w1]
    x10 = x[:, h1][:, :, w0]
    x11 = x[:, h1][:, :, w1]
    fh = fh[None, :, None, None]
    fw = fw[None, None, :, None]
    top = x00 * (1 - fw) + x01 * fw
    bot = x10 * (1 - fw) + x11 * fw
    return top * (1 - fh) + bot * fh


# ----------------------------------------------------------------------------
# Modules
# ----------------------------------------------------------------------------
class ConvBNAct:
    def __init__(self, pg, cin, cout, k=1, stride=1, dilation=1, act="leaky"):
        self.k, self.stride, self.dilation, self.act = k, stride, dilation, act
        self.w = pg.conv(k, k, cin, cout)
        self.scale, self.shift = pg.bn(cout)

    def __call__(self, x):
        if self.k == 1:
            w2 = self.w.reshape(self.w.shape[2], self.w.shape[3])
            return conv1x1_bn(x, w2, self.scale, self.shift, self.act)
        return conv_im2col_bn(x, self.w, self.scale, self.shift,
                              self.stride, self.dilation, self.act)


class DWConvBN:
    def __init__(self, pg, c, k=3, stride=1, dilation=1, act="none"):
        self.w = pg.dwconv(k, k, c)
        self.scale, self.shift = pg.bn(c)
        self.stride, self.dilation, self.act = stride, dilation, act

    def __call__(self, x):
        return depthwise_conv_bn(x, self.w, self.scale, self.shift,
                                 self.stride, self.dilation, self.act)


class ShuffleRes:
    # TODO(synk): ShuffleRes / ShuffleResIABN source not provided; standard
    # ShuffleNetV2 unit (leaky-relu activations) with dilation on the depthwise conv.
    def __init__(self, pg, inp, oup, stride=1, dilate=1, branch_model=1):
        self.branch_model = branch_model
        half = oup // 2
        if branch_model == 1:
            self.b2_pw1 = ConvBNAct(pg, inp // 2, half, 1, act="leaky")
            self.b2_dw = DWConvBN(pg, half, 3, stride, dilate, act="none")
            self.b2_pw2 = ConvBNAct(pg, half, half, 1, act="leaky")
        else:
            self.b1_dw = DWConvBN(pg, inp, 3, stride, dilate, act="none")
            self.b1_pw = ConvBNAct(pg, inp, half, 1, act="leaky")
            self.b2_pw1 = ConvBNAct(pg, inp, half, 1, act="leaky")
            self.b2_dw = DWConvBN(pg, half, 3, stride, dilate, act="none")
            self.b2_pw2 = ConvBNAct(pg, half, half, 1, act="leaky")

    def __call__(self, x):
        if self.branch_model == 1:
            C = x.shape[-1]
            x1, x2 = x[..., : C // 2], x[..., C // 2:]
            y2 = self.b2_pw2(self.b2_dw(self.b2_pw1(x2)))
            out = jnp.concatenate([x1, y2], axis=-1)
        else:
            y1 = self.b1_pw(self.b1_dw(x))
            y2 = self.b2_pw2(self.b2_dw(self.b2_pw1(x)))
            out = jnp.concatenate([y1, y2], axis=-1)
        return channel_shuffle(out, 2)


class DSASPP:
    # TODO(synk): DSASPPInPlaceABNBlock source not provided; standard depthwise-
    # separable ASPP (image pool + 1x1 + three dilated DS branches) with a 2x
    # bilinear upsample so the output matches stg1 resolution.
    def __init__(self, pg, cin, cout, dilations):
        self.gap_conv = ConvBNAct(pg, cin, cout, 1, act="leaky")
        self.conv1 = ConvBNAct(pg, cin, cout, 1, act="leaky")
        self.branches = []
        for d in dilations:
            self.branches.append((DWConvBN(pg, cin, 3, 1, d, act="none"),
                                  ConvBNAct(pg, cin, cout, 1, act="leaky")))
        self.project = ConvBNAct(pg, cout * (2 + len(dilations)), cout, 1, act="leaky")

    def __call__(self, x):
        N, H, W, _ = x.shape
        g = self.gap_conv(global_avg_pool(x))
        g = jnp.broadcast_to(g, (N, H, W, g.shape[-1]))
        outs = [g, self.conv1(x)]
        for dw, pw in self.branches:
            outs.append(pw(dw(x)))
        y = self.project(jnp.concatenate(outs, axis=-1))
        return bilinear_upsample(y, 2 * H, 2 * W)


class UnsharpMask:
    # TODO(synk): UnsharpMaskV2 source not provided; fixed separable 9x9 Gaussian
    # blur + (x + amount*(x - blur)) + norm_act (threshold=0 -> no thresholding).
    def __init__(self, pg, c, k=9, amount=1.0):
        sigma = 0.3 * ((k - 1) * 0.5 - 1) + 0.8
        g = np.exp(-0.5 * ((np.arange(k) - (k - 1) / 2.0) / sigma) ** 2)
        g = (g / g.sum()).astype(np.float32)
        self.gh = jnp.asarray(np.tile(g.reshape(k, 1, 1), (1, 1, c)))   # (k,1,C)
        self.gw = jnp.asarray(np.tile(g.reshape(1, k, 1), (1, 1, c)))   # (1,k,C)
        self.amount = float(amount)
        self.scale, self.shift = pg.bn(c)
        self._ones = jnp.ones((c,), jnp.float32)
        self._zeros = jnp.zeros((c,), jnp.float32)

    def __call__(self, x):
        b = depthwise_conv_bn(x, self.gh, self._ones, self._zeros, 1, 1, "none")
        b = depthwise_conv_bn(b, self.gw, self._ones, self._zeros, 1, 1, "none")
        return unsharp_combine(x, b, self.scale, self.shift, self.amount)


class PBCSA:
    # TODO(synk): PBCSABlock source not provided; SCSE-style channel (squeeze-
    # excite) + spatial (dilated 3x3 -> sigmoid) attention with residual, fused
    # into a single Pallas halo kernel.
    def __init__(self, pg, c, reduct_ratio=16, dilation=4, use_res=True):
        r = max(c // reduct_ratio, 1)
        self.r, self.c, self.use_res, self.dilation = r, c, use_res, dilation
        self.w1 = pg.conv(1, 1, c, r).reshape(c, r)
        self.w2 = pg.conv(1, 1, r, c).reshape(r, c)
        self.ws3 = pg.conv(3, 3, c, 1).reshape(9, 1, c)    # spatial-gate taps
        self._ones_r = jnp.ones((r,), jnp.float32)
        self._zeros_r = jnp.zeros((r,), jnp.float32)
        self._ones_c = jnp.ones((c,), jnp.float32)
        self._zeros_c = jnp.zeros((c,), jnp.float32)

    def __call__(self, x):
        N, H, W, C = x.shape
        g = global_avg_pool(x).reshape(N, C)
        h = matmul_affine(g, self.w1, self._ones_r, self._zeros_r, "relu")
        ch = matmul_affine(h, self.w2, self._ones_c, self._zeros_c, "sigmoid")
        return pbcsa_fused(x, self.ws3, ch.reshape(N, 1, C),
                           dilation=self.dilation, use_res=self.use_res)


class ShuffleNetV2PlusPallas:
    def __init__(self, pg, num_classes=19, fuse_chns=512, aspp_chns=256,
                 aspp_dilate=(12, 24, 36), width_multi=1.0):
        stg_chns = {0.5: [-1, 24, 48, 96, 192], 1.0: [-1, 24, 116, 232, 464],
                    1.5: [-1, 24, 176, 352, 704], 2.0: [-1, 24, 224, 488, 976]}[width_multi]
        stg_repeats = [4, 8, 4]
        stride = [2, 1, 1]
        dilate = [1, 2, 4]

        # mod1: conv3x3 s2 + BN + LeakyReLU + maxpool3x3 s2
        self.mod1_w = pg.conv(3, 3, 3, stg_chns[1])
        self.mod1_scale, self.mod1_shift = pg.bn(stg_chns[1])

        input_channel = stg_chns[1]
        self.stages = []
        for s in range(3):
            blocks = []
            for b in range(stg_repeats[s]):
                if b == 0:
                    blocks.append(ShuffleRes(pg, input_channel, stg_chns[s + 2],
                                             stride=stride[s], dilate=1, branch_model=2))
                else:
                    blocks.append(ShuffleRes(pg, input_channel, stg_chns[s + 2],
                                             stride=1, dilate=dilate[s], branch_model=1))
                input_channel = stg_chns[s + 2]
            self.stages.append(blocks)

        feat_chns = stg_chns[1] + stg_chns[2] + stg_chns[3] + stg_chns[4]
        self.feat_fusion = ShuffleRes(pg, feat_chns, fuse_chns, 1, 2, 2)   # ShuffleResIABN
        self.pyramid_pool = DSASPP(pg, fuse_chns, aspp_chns, aspp_dilate)
        self.final_fusion = ShuffleRes(pg, aspp_chns + stg_chns[1], aspp_chns, 1, 2, 2)
        self.usm = UnsharpMask(pg, aspp_chns, 9, 1.0)
        self.aspp_scse = PBCSA(pg, aspp_chns, 16, 4, True)

        # score: Dropout2d(eval=identity) + InPlaceABN + 1x1 conv (with bias)
        self.score_scale, self.score_shift = pg.bn(aspp_chns)
        self.score_w = pg.conv(1, 1, aspp_chns, num_classes).reshape(aspp_chns, num_classes)
        self.score_b = jnp.zeros((num_classes,), jnp.float32)
        self._score_ones = jnp.ones((num_classes,), jnp.float32)

    def __call__(self, x_nchw):
        _, _, in_h, in_w = x_nchw.shape
        assert in_h % 8 == 0 and in_w % 8 == 0, "> Error, in_size must be product of 8!!!"
        x = jnp.transpose(x_nchw, (0, 2, 3, 1)).astype(jnp.float32)   # NCHW -> NHWC

        # mod1
        y = conv_im2col_bn(x, self.mod1_w, self.mod1_scale, self.mod1_shift, 2, 1, "leaky")
        stg1 = maxpool_3x3_s2(y)
        stg1_1 = maxpool_3x3_s2(stg1)

        def run(blocks, v):
            for blk in blocks:
                v = blk(v)
            return v

        stg2 = run(self.stages[0], stg1)
        stg3 = run(self.stages[1], stg2)
        stg4 = run(self.stages[2], stg3)

        feat = self.feat_fusion(jnp.concatenate([stg2, stg4, stg3, stg1_1], axis=-1))
        feat = self.final_fusion(
            jnp.concatenate([stg1, self.pyramid_pool(feat)], axis=-1))
        feat = self.aspp_scse(self.usm(feat))

        feat = affine_act(feat, self.score_scale, self.score_shift, "leaky")
        score = conv1x1_bn(feat, self.score_w, self._score_ones, self.score_b, "none")

        out = bilinear_upsample(score, in_h, in_w)          # align_corners=True
        return jnp.transpose(out, (0, 3, 1, 2))              # NHWC -> NCHW


# ----------------------------------------------------------------------------
if __name__ == "__main__":
    pg = ParamGen(seed=42)
    model = ShuffleNetV2PlusPallas(pg, num_classes=19, width_multi=1.0)

    x = jax.random.normal(jax.random.PRNGKey(0), (2, 3, 32, 32), jnp.float32)
    out = model(x)
    out = jax.block_until_ready(out)
    assert out.shape == (2, 19, 32, 32), out.shape
    assert bool(jnp.all(jnp.isfinite(out)))
    print("KERNEL_OK")
</pallas_src>

<mosaic_0001>
module attributes {stable_mosaic.version = 11 : i64} {
  func.func @_mm_affine_kernel(%arg0: i32, %arg1: memref<512x27xf32, #tpu.memory_space<vmem>>, %arg2: memref<27x24xf32, #tpu.memory_space<vmem>>, %arg3: memref<1x24xf32, #tpu.memory_space<vmem>>, %arg4: memref<1x24xf32, #tpu.memory_space<vmem>>, %arg5: memref<512x24xf32, #tpu.memory_space<vmem>>) attributes {dimension_semantics = [#tpu.dimension_semantics<parallel>], iteration_bounds = array<i64: 1>, scalar_prefetch = 0 : i64, scratch_operands = 0 : i64, tpu.core_type = #tpu.core_type<tc>, window_params = [{transform_indices = @transform_0, window_bounds = array<i64: 512, 27>}, {pipeline_mode = #tpu.pipeline_mode<synchronous>, transform_indices = @transform_1, window_bounds = array<i64: 27, 24>}, {pipeline_mode = #tpu.pipeline_mode<synchronous>, transform_indices = @transform_2, window_bounds = array<i64: 1, 24>}, {pipeline_mode = #tpu.pipeline_mode<synchronous>, transform_indices = @transform_3, window_bounds = array<i64: 1, 24>}, {transform_indices = @transform_4, window_bounds = array<i64: 512, 24>}]} {
    %c0 = arith.constant 0 : index
    %c0_0 = arith.constant 0 : index
    %0 = vector.load %arg1[%c0, %c0_0] : memref<512x27xf32, #tpu.memory_space<vmem>>, vector<512x27xf32>
    %c0_1 = arith.constant 0 : index
    %c0_2 = arith.constant 0 : index
    %1 = vector.load %arg2[%c0_1, %c0_2] : memref<27x24xf32, #tpu.memory_space<vmem>>, vector<27x24xf32>
    %cst = arith.constant dense<0.000000e+00> : vector<512x24xf32>
    %2 = tpu.matmul %0, %1, %cst {dimension_numbers = #tpu.dot_dimension_numbers<[1], [0], [0], [1], [0, 0, 1, 1], [], []>} : vector<512x27xf32>, vector<27x24xf32>, vector<512x24xf32> -> vector<512x24xf32>
    %c0_3 = arith.constant 0 : index
    %c0_4 = arith.constant 0 : index
    %3 = vector.load %arg3[%c0_3, %c0_4] : memref<1x24xf32, #tpu.memory_space<vmem>>, vector<1x24xf32>
    %4 = vector.broadcast %3 : vector<1x24xf32> to vector<512x24xf32>
    %5 = arith.mulf %2, %4 : vector<512x24xf32>
    %c0_5 = arith.constant 0 : index
    %c0_6 = arith.constant 0 : index
    %6 = vector.load %arg4[%c0_5, %c0_6] : memref<1x24xf32, #tpu.memory_space<vmem>>, vector<1x24xf32>
    %7 = vector.broadcast %6 : vector<1x24xf32> to vector<512x24xf32>
    %8 = arith.addf %5, %7 : vector<512x24xf32>
    %cst_7 = arith.constant 0.000000e+00 : f32
    %9 = vector.broadcast %cst_7 : f32 to vector<512x24xf32>
    %10 = arith.cmpf ogt, %8, %9 : vector<512x24xf32>
    %cst_8 = arith.constant 0.00999999977 : f32
    %11 = vector.broadcast %cst_8 : f32 to vector<512x24xf32>
    %12 = arith.mulf %11, %8 : vector<512x24xf32>
    %13 = arith.select %10, %8, %12 : vector<512x24xi1>, vector<512x24xf32>
    %c0_9 = arith.constant 0 : index
    %c0_10 = arith.constant 0 : index
    %14 = vector.load %arg5[%c0_9, %c0_10] : memref<512x24xf32, #tpu.memory_space<vmem>>, vector<512x24xf32>
    tpu.vector_store %arg5[%c0_9, %c0_10], %13 {strides = array<i32>} : memref<512x24xf32, #tpu.memory_space<vmem>>, vector<512x24xf32>,
    return
  }
  func.func @transform_0(%arg0: i32) -> (i32, i32) {
    %c0_i32 = arith.constant 0 : i32
    %c0_i32_0 = arith.constant 0 : i32
    return %arg0, %c0_i32 : i32, i32
  }
  func.func @transform_1(%arg0: i32) -> (i32, i32) {
    %c0_i32 = arith.constant 0 : i32
    %c0_i32_0 = arith.constant 0 : i32
    %c0_i32_1 = arith.constant 0 : i32
    return %c0_i32, %c0_i32_0 : i32, i32
  }
  func.func @transform_2(%arg0: i32) -> (i32, i32) {
    %c0_i32 = arith.constant 0 : i32
    %c0_i32_0 = arith.constant 0 : i32
    %c0_i32_1 = arith.constant 0 : i32
    return %c0_i32, %c0_i32_0 : i32, i32
  }
  func.func @transform_3(%arg0: i32) -> (i32, i32) {
    %c0_i32 = arith.constant 0 : i32
    %c0_i32_0 = arith.constant 0 : i32
    %c0_i32_1 = arith.constant 0 : i32
    return %c0_i32, %c0_i32_0 : i32, i32
  }
  func.func @transform_4(%arg0: i32) -> (i32, i32) {
    %c0_i32 = arith.constant 0 : i32
    %c0_i32_0 = arith.constant 0 : i32
    return %arg0, %c0_i32 : i32, i32
  }
}

</mosaic_0001>

<bundles_post_ra>
// kernel: matmul_affine.1
= control target key start
LH: loop header
LB: loop body
LE: loop exit
PB: predicated region body
PF: predicated region fallthrough
CT: control target
= control target key end

     0   :  { %vm278_vm0 = vcmask 1042432   ;;  %vm85_vm1 = vcmask 220160   ;;  %vm819_vm2 = vcmask 195584   ;;  %s1654_s1 = inlined_call_operand.vmem [shape: f32[27,24], index: 1, kind: input, shape index: {}]   ;;  %s1655_s0 = inlined_call_operand.vmem [shape: f32[512,27], index: 0, kind: input, shape index: {}]   ;;  %s1656_s2 = inlined_call_operand.vmem [shape: f32[1,24], index: 2, kind: input, shape index: {}]   ;;  %s1657_s3 = inlined_call_operand.vmem [shape: f32[1,24], index: 3, kind: input, shape index: {}]   ;;  %s1658_s4 = inlined_call_operand.vmem [shape: f32[512,24], index: 4, kind: output, shape index: {}]  }
   0x1   :  { %v84_v0 = vld [vmem:[%s1654_s1 + $0x18] sm:$0x7]  ;;  %v83_v1 = vld [vmem:[%s1654_s1 + $0x10] sm:$0xff]  ;;  %v82_v2 = vld [vmem:[%s1654_s1 + $0x8] sm:$0xff] }
   0x2   :  { %954 = vmatpush.msk.msra.mxu2 %vm278_vm0, %v84_v0  ;;  %955 = vmatpush.msk.msra.mxu3 %vm278_vm0, %v84_v0  ;;  %v81_v3 = vld [vmem:[%s1654_s1] sm:$0xff]  ;;  %v50_v8 = vld [vmem:[%s1655_s0 + $0x108] sm:$0xff]  ;;  %v51_v12 = vld [vmem:[%s1655_s0 + $0x110] sm:$0xff] }
   0x3   :  { %888 = vmatpush.msk.msra.mxu0 %vm278_vm0, %v84_v0  ;;  %953 = vmatpush.msk.msra.mxu1 %vm278_vm0, %v84_v0  ;;  %v49_v4 = vld [vmem:[%s1655_s0 + $0x100] sm:$0xff]  ;;  %v66_v9 = vld [vmem:[%s1655_s0 + $0x188] sm:$0xff]  ;;  %v67_v13 = vld [vmem:[%s1655_s0 + $0x190] sm:$0xff] }
   0x4   :  { %957 = vmatpush.msra.mxu2 %v83_v1  ;;  %958 = vmatpush.msra.mxu3 %v83_v1  ;;  %v65_v5 = vld [vmem:[%s1655_s0 + $0x180] sm:$0xff]  ;;  %v18_v10 = vld [vmem:[%s1655_s0 + $0x8] sm:$0xff]  ;;  %v19_v14 = vld [vmem:[%s1655_s0 + $0x10] sm:$0xff] }
   0x5   :  { %295 = vmatpush.msra.mxu0 %v83_v1  ;;  %956 = vmatpush.msra.mxu1 %v83_v1  ;;  %v17_v6 = vld [vmem:[%s1655_s0] sm:$0xff]  ;;  %v34_v11 = vld [vmem:[%s1655_s0 + $0x88] sm:$0xff]  ;;  %v35_v15 = vld [vmem:[%s1655_s0 + $0x90] sm:$0xff] }
   0x6   :  { %960 = vmatpush.msra.mxu2 %v82_v2  ;;  %961 = vmatpush.msra.mxu3 %v82_v2  ;;  %v33_v7 = vld [vmem:[%s1655_s0 + $0x80] sm:$0xff]  ;;  %v52_v16 = vld [vmem:[%s1655_s0 + $0x118] sm:$0xff]  ;;  %v54_v24 = vld [vmem:[%s1655_s0 + $0x128] sm:$0xff] }
   0x7   :  { %296 = vmatpush.msra.mxu0 %v82_v2  ;;  %959 = vmatpush.msra.mxu1 %v82_v2  ;;  %v68_v17 = vld [vmem:[%s1655_s0 + $0x198] sm:$0xff]  ;;  %v53_v20 = vld [vmem:[%s1655_s0 + $0x120] sm:$0xff]  ;;  %v70_v25 = vld [vmem:[%s1655_s0 + $0x1a8] sm:$0xff] }
   0x8   :  { %963 = vmatpush.msra.mxu2 %v81_v3  ;;  %964 = vmatpush.msra.mxu3 %v81_v3  ;;  %v20_v18 = vld [vmem:[%s1655_s0 + $0x18] sm:$0xff]  ;;  %v69_v21 = vld [vmem:[%s1655_s0 + $0x1a0] sm:$0xff]  ;;  %v22_v26 = vld [vmem:[%s1655_s0 + $0x28] sm:$0xff] }
   0x9   :  { %921 = vmatmul.msk.f32.vlgmr.msra.gmra.mxu2 %vm85_vm1, %v49_v4  ;;  %937 = vmatmul.msk.f32.vlgmr.msra.gmra.mxu3 %vm85_vm1, %v65_v5  ;;  %v36_v19 = vld [vmem:[%s1655_s0 + $0x98] sm:$0xff]  ;;  %v21_v22 = vld [vmem:[%s1655_s0 + $0x20] sm:$0xff]  ;;  %v38_v27 = vld [vmem:[%s1655_s0 + $0xa8] sm:$0xff] }
   0xa   :  { %297 = vmatpush.msra.mxu0 %v81_v3  ;;  %962 = vmatpush.msra.mxu1 %v81_v3  ;;  %v37_v23 = vld [vmem:[%s1655_s0 + $0xa0] sm:$0xff]  ;;  %v55_v28 = vld [vmem:[%s1655_s0 + $0x130] sm:$0xff]  ;;  %v56_v32 = vld [vmem:[%s1655_s0 + $0x138] sm:$0xff] }
   0xb   :  { %889 = vmatmul.msk.f32.vlgmr.msra.gmra.mxu0 %vm85_vm1, %v17_v6  ;;  %905 = vmatmul.msk.f32.vlgmr.msra.gmra.mxu1 %vm85_vm1, %v33_v7  ;;  %v71_v29 = vld [vmem:[%s1655_s0 + $0x1b0] sm:$0xff]  ;;  %v72_v33 = vld [vmem:[%s1655_s0 + $0x1b8] sm:$0xff]  ;;  %v57_v36 = vld [vmem:[%s1655_s0 + $0x140] sm:$0xff] }
   0xc   :  { %v23_v30 = vld [vmem:[%s1655_s0 + $0x30] sm:$0xff]  ;;  %v24_v34 = vld [vmem:[%s1655_s0 + $0x38] sm:$0xff]  ;;  %v73_v37 = vld [vmem:[%s1655_s0 + $0x1c0] sm:$0xff] }
   0xd   :  { %v39_v31 = vld [vmem:[%s1655_s0 + $0xb0] sm:$0xff]  ;;  %v40_v35 = vld [vmem:[%s1655_s0 + $0xb8] sm:$0xff]  ;;  %v25_v38 = vld [vmem:[%s1655_s0 + $0x40] sm:$0xff] }
   0xe   :  { %v41_v39 = vld [vmem:[%s1655_s0 + $0xc0] sm:$0xff]  ;;  %v58_v40 = vld [vmem:[%s1655_s0 + $0x148] sm:$0xff]  ;;  %v59_v44 = vld [vmem:[%s1655_s0 + $0x150] sm:$0xff] }
   0xf   :  { %v74_v41 = vld [vmem:[%s1655_s0 + $0x1c8] sm:$0xff]  ;;  %v75_v45 = vld [vmem:[%s1655_s0 + $0x1d0] sm:$0xff]  ;;  %v60_v48 = vld [vmem:[%s1655_s0 + $0x158] sm:$0xff] }
  0x10   :  { %v26_v42 = vld [vmem:[%s1655_s0 + $0x48] sm:$0xff]  ;;  %v27_v46 = vld [vmem:[%s1655_s0 + $0x50] sm:$0xff]  ;;  %v76_v49 = vld [vmem:[%s1655_s0 + $0x1d8] sm:$0xff] }
  0x11   :  { %922 = vmatmul.msk.f32.gmra.mxu2 %vm85_vm1, %v50_v8  ;;  %938 = vmatmul.msk.f32.gmra.mxu3 %vm85_vm1, %v66_v9  ;;  %v42_v43 = vld [vmem:[%s1655_s0 + $0xc8] sm:$0xff]  ;;  %v43_v47 = vld [vmem:[%s1655_s0 + $0xd0] sm:$0xff]  ;;  %v28_v50 = vld [vmem:[%s1655_s0 + $0x58] sm:$0xff] }
  0x12   :  { %v44_v51 = vld [vmem:[%s1655_s0 + $0xd8] sm:$0xff]  ;;  %v61_v52 = vld [vmem:[%s1655_s0 + $0x160] sm:$0xff]  ;;  %v62_v56 = vld [vmem:[%s1655_s0 + $0x168] sm:$0xff] }
  0x13   :  { %890 = vmatmul.msk.f32.gmra.mxu0 %vm85_vm1, %v18_v10  ;;  %906 = vmatmul.msk.f32.gmra.mxu1 %vm85_vm1, %v34_v11  ;;  %v77_v53 = vld [vmem:[%s1655_s0 + $0x1e0] sm:$0xff]  ;;  %v78_v57 = vld [vmem:[%s1655_s0 + $0x1e8] sm:$0xff]  ;;  %v63_v60 = vld [vmem:[%s1655_s0 + $0x170] sm:$0xff] }
  0x14   :  { %v29_v54 = vld [vmem:[%s1655_s0 + $0x60] sm:$0xff]  ;;  %v30_v58 = vld [vmem:[%s1655_s0 + $0x68] sm:$0xff]  ;;  %v79_v61 = vld [vmem:[%s1655_s0 + $0x1f0] sm:$0xff] }
  0x15   :  { %v45_v55 = vld [vmem:[%s1655_s0 + $0xe0] sm:$0xff]  ;;  %v46_v59 = vld [vmem:[%s1655_s0 + $0xe8] sm:$0xff]  ;;  %v31_v62 = vld [vmem:[%s1655_s0 + $0x70] sm:$0xff] }
  0x16   :  { %v47_v63 = vld [vmem:[%s1655_s0 + $0xf0] sm:$0xff]  ;;  %v64_v0 = vld [vmem:[%s1655_s0 + $0x178] sm:$0xff]  ;;  %v1263_v4 = vld [vmem:[%s1656_s2] ss:$0 sm:$0xff] }
  0x17   :  { %v80_v1 = vld [vmem:[%s1655_s0 + $0x1f8] sm:$0xff]  ;;  %v1268_v5 = vld [vmem:[%s1657_s3] ss:$0 sm:$0xff] }
  0x18   :  { %v32_v2 = vld [vmem:[%s1655_s0 + $0x78] sm:$0xff] }
  0x19   :  { %923 = vmatmul.msk.f32.gmra.mxu2 %vm85_vm1, %v51_v12  ;;  %939 = vmatmul.msk.f32.gmra.mxu3 %vm85_vm1, %v67_v13  ;;  %v48_v3 = vld [vmem:[%s1655_s0 + $0xf8] sm:$0xff] }
  0x1b   :  { %891 = vmatmul.msk.f32.gmra.mxu0 %vm85_vm1, %v19_v14  ;;  %907 = vmatmul.msk.f32.gmra.mxu1 %vm85_vm1, %v35_v15 }
  0x21   :  { %924 = vmatmul.msk.f32.gmra.mxu2 %vm85_vm1, %v52_v16  ;;  %940 = vmatmul.msk.f32.gmra.mxu3 %vm85_vm1, %v68_v17 }
  0x23   :  { %892 = vmatmul.msk.f32.gmra.mxu0 %vm85_vm1, %v20_v18  ;;  %908 = vmatmul.msk.f32.gmra.mxu1 %vm85_vm1, %v36_v19 }
  0x29   :  { %925 = vmatmul.msk.f32.gmra.mxu2 %vm85_vm1, %v53_v20  ;;  %941 = vmatmul.msk.f32.gmra.mxu3 %vm85_vm1, %v69_v21 }
  0x2b   :  { %893 = vmatmul.msk.f32.gmra.mxu0 %vm85_vm1, %v21_v22  ;;  %909 = vmatmul.msk.f32.gmra.mxu1 %vm85_vm1, %v37_v23 }
  0x31   :  { %926 = vmatmul.msk.f32.gmra.mxu2 %vm85_vm1, %v54_v24  ;;  %942 = vmatmul.msk.f32.gmra.mxu3 %vm85_vm1, %v70_v25 }
  0x33   :  { %894 = vmatmul.msk.f32.gmra.mxu0 %vm85_vm1, %v22_v26  ;;  %910 = vmatmul.msk.f32.gmra.mxu1 %vm85_vm1, %v38_v27 }
  0x39   :  { %927 = vmatmul.msk.f32.gmra.mxu2 %vm85_vm1, %v55_v28  ;;  %943 = vmatmul.msk.f32.gmra.mxu3 %vm85_vm1, %v71_v29 }
  0x3b   :  { %895 = vmatmul.msk.f32.gmra.mxu0 %vm85_vm1, %v23_v30  ;;  %911 = vmatmul.msk.f32.gmra.mxu1 %vm85_vm1, %v39_v31 }
  0x41   :  { %928 = vmatmul.msk.f32.gmra.mxu2 %vm85_vm1, %v56_v32  ;;  %944 = vmatmul.msk.f32.gmra.mxu3 %vm85_vm1, %v72_v33 }
  0x43   :  { %896 = vmatmul.msk.f32.gmra.mxu0 %vm85_vm1, %v24_v34  ;;  %912 = vmatmul.msk.f32.gmra.mxu1 %vm85_vm1, %v40_v35 }
  0x49   :  { %929 = vmatmul.msk.f32.gmra.mxu2 %vm85_vm1, %v57_v36  ;;  %945 = vmatmul.msk.f32.gmra.mxu3 %vm85_vm1, %v73_v37 }
  0x4b   :  { %897 = vmatmul.msk.f32.gmra.mxu0 %vm85_vm1, %v25_v38  ;;  %913 = vmatmul.msk.f32.gmra.mxu1 %vm85_vm1, %v41_v39 }
  0x51   :  { %930 = vmatmul.msk.f32.gmra.mxu2 %vm85_vm1, %v58_v40  ;;  %946 = vmatmul.msk.f32.gmra.mxu3 %vm85_vm1, %v74_v41 }
  0x53   :  { %898 = vmatmul.msk.f32.gmra.mxu0 %vm85_vm1, %v26_v42  ;;  %914 = vmatmul.msk.f32.gmra.mxu1 %vm85_vm1, %v42_v43 }
  0x59   :  { %931 = vmatmul.msk.f32.gmra.mxu2 %vm85_vm1, %v59_v44  ;;  %947 = vmatmul.msk.f32.gmra.mxu3 %vm85_vm1, %v75_v45 }
  0x5b   :  { %899 = vmatmul.msk.f32.gmra.mxu0 %vm85_vm1, %v27_v46  ;;  %915 = vmatmul.msk.f32.gmra.mxu1 %vm85_vm1, %v43_v47 }
  0x61   :  { %932 = vmatmul.msk.f32.gmra.mxu2 %vm85_vm1, %v60_v48  ;;  %948 = vmatmul.msk.f32.gmra.mxu3 %vm85_vm1, %v76_v49 }
  0x63   :  { %900 = vmatmul.msk.f32.gmra.mxu0 %vm85_vm1, %v28_v50  ;;  %916 = vmatmul.msk.f32.gmra.mxu1 %vm85_vm1, %v44_v51 }
  0x69   :  { %933 = vmatmul.msk.f32.gmra.mxu2 %vm85_vm1, %v61_v52  ;;  %949 = vmatmul.msk.f32.gmra.mxu3 %vm85_vm1, %v77_v53 }
  0x6b   :  { %901 = vmatmul.msk.f32.gmra.mxu0 %vm85_vm1, %v29_v54  ;;  %917 = vmatmul.msk.f32.gmra.mxu1 %vm85_vm1, %v45_v55 }
  0x71   :  { %934 = vmatmul.msk.f32.gmra.mxu2 %vm85_vm1, %v62_v56  ;;  %950 = vmatmul.msk.f32.gmra.mxu3 %vm85_vm1, %v78_v57 }
  0x73   :  { %902 = vmatmul.msk.f32.gmra.mxu0 %vm85_vm1, %v30_v58  ;;  %918 = vmatmul.msk.f32.gmra.mxu1 %vm85_vm1, %v46_v59 }
  0x79   :  { %935 = vmatmul.msk.f32.gmra.mxu2 %vm85_vm1, %v63_v60  ;;  %951 = vmatmul.msk.f32.gmra.mxu3 %vm85_vm1, %v79_v61 }
  0x7b   :  { %903 = vmatmul.msk.f32.gmra.mxu0 %vm85_vm1, %v31_v62  ;;  %919 = vmatmul.msk.f32.gmra.mxu1 %vm85_vm1, %v47_v63 }
  0x81   :  { %936 = vmatmul.msk.f32.gmra.mxu2 %vm85_vm1, %v64_v0  ;;  %952 = vmatmul.msk.f32.gmra.mxu3 %vm85_vm1, %v80_v1 }
  0x83   :  { %904 = vmatmul.msk.f32.gmra.mxu0 %vm85_vm1, %v32_v2  ;;  %920 = vmatmul.msk.f32.gmra.mxu1 %vm85_vm1, %v48_v3 }
  0x88   :  { %v299_v6 = vpop.f32.mrf.mxu0  ;;  %v347_v7 = vpop.f32.mrf.mxu1 }
  0x89   :  { %v495_v8 = vmul.f32 %v1263_v4, %v299_v6  ;;  %v511_v9 = vmul.f32 %v1263_v4, %v347_v7 }
  0x8b   :  { %v563_v10 = vadd.f32 %v1268_v5, %v495_v8  ;;  %v579_v11 = vadd.f32 %v1268_v5, %v511_v9 }
  0x8c   :  { %v395_v12 = vpop.f32.mrf.mxu2  ;;  %v443_v13 = vpop.f32.mrf.mxu3 }
  0x8d   :  { %vm627_vm3 = vcmp.gt.f32.partialorder %v563_v10, 0.0  ;;  %v691_v14 = vmul.f32 0.01, %v563_v10  ;;  %vm643_vm4 = vcmp.gt.f32.partialorder %v579_v11, 0.0  ;;  %v707_v15 = vmul.f32 0.01, %v579_v11 }
  0x8e   :  { %v527_v16 = vmul.f32 %v1263_v4, %v395_v12  ;;  %v543_v17 = vmul.f32 %v1263_v4, %v443_v13 }
  0x8f   :  { %v755_v18 = vsel %vm627_vm3, %v563_v10, %v691_v14  ;;  %v771_v19 = vsel %vm643_vm4, %v579_v11, %v707_v15 }
  0x90   :  { %820 = vst.msk [vmem:[%s1658_s4] sm:$0xff] %vm819_vm2, %v755_v18  ;;  %v595_v20 = vadd.f32 %v1268_v5, %v527_v16  ;;  %v611_v21 = vadd.f32 %v1268_v5, %v543_v17  ;;  %v302_v22 = vpop.f32.mrf.mxu0  ;;  %v350_v23 = vpop.f32.mrf.mxu1 }
  0x91   :  { %836 = vst.msk [vmem:[%s1658_s4 + $0x80] sm:$0xff] %vm819_vm2, %v771_v19  ;;  %v496_v24 = vmul.f32 %v1263_v4, %v302_v22  ;;  %v512_v25 = vmul.f32 %v1263_v4, %v350_v23 }
  0x92   :  { %vm659_vm5 = vcmp.gt.f32.partialorder %v595_v20, 0.0  ;;  %v723_v26 = vmul.f32 0.01, %v595_v20  ;;  %vm675_vm6 = vcmp.gt.f32.partialorder %v611_v21, 0.0  ;;  %v739_v27 = vmul.f32 0.01, %v611_v21 }
  0x93   :  { %v564_v28 = vadd.f32 %v1268_v5, %v496_v24  ;;  %v580_v29 = vadd.f32 %v1268_v5, %v512_v25 }
  0x94   :  { %v787_v30 = vsel %vm659_vm5, %v595_v20, %v723_v26  ;;  %v803_v31 = vsel %vm675_vm6, %v611_v21, %v739_v27  ;;  %v398_v32 = vpop.f32.mrf.mxu2  ;;  %v446_v33 = vpop.f32.mrf.mxu3 }
  0x95   :  { %852 = vst.msk [vmem:[%s1658_s4 + $0x100] sm:$0xff] %vm819_vm2, %v787_v30  ;;  %vm628_vm7 = vcmp.gt.f32.partialorder %v564_v28, 0.0  ;;  %v692_v34 = vmul.f32 0.01, %v564_v28  ;;  %vm644_vm8 = vcmp.gt.f32.partialorder %v580_v29, 0.0  ;;  %v528_v35 = vmul.f32 %v1263_v4, %v398_v32 }
  0x96   :  { %868 = vst.msk [vmem:[%s1658_s4 + $0x180] sm:$0xff] %vm819_vm2, %v803_v31  ;;  %v708_v36 = vmul.f32 0.01, %v580_v29  ;;  %v544_v37 = vmul.f32 %v1263_v4, %v446_v33 }
  0x97   :  { %v756_v38 = vsel %vm628_vm7, %v564_v28, %v692_v34  ;;  %v596_v39 = vadd.f32 %v1268_v5, %v528_v35 }
  0x98   :  { %821 = vst.msk [vmem:[%s1658_s4 + $0x8] sm:$0xff] %vm819_vm2, %v756_v38  ;;  %v772_v40 = vsel %vm644_vm8, %v580_v29, %v708_v36  ;;  %v612_v41 = vadd.f32 %v1268_v5, %v544_v37  ;;  %v305_v42 = vpop.f32.mrf.mxu0  ;;  %v353_v43 = vpop.f32.mrf.mxu1 }
  0x99   :  { %837 = vst.msk [vmem:[%s1658_s4 + $0x88] sm:$0xff] %vm819_vm2, %v772_v40  ;;  %vm660_vm9 = vcmp.gt.f32.partialorder %v596_v39, 0.0  ;;  %v724_v44 = vmul.f32 0.01, %v596_v39  ;;  %v497_v45 = vmul.f32 %v1263_v4, %v305_v42  ;;  %v513_v46 = vmul.f32 %v1263_v4, %v353_v43 }
  0x9a   :  { %vm676_vm10 = vcmp.gt.f32.partialorder %v612_v41, 0.0  ;;  %v740_v47 = vmul.f32 0.01, %v612_v41 }
  0x9b   :  { %v788_v48 = vsel %vm660_vm9, %v596_v39, %v724_v44  ;;  %v565_v49 = vadd.f32 %v1268_v5, %v497_v45  ;;  %v581_v50 = vadd.f32 %v1268_v5, %v513_v46 }
  0x9c   :  { %853 = vst.msk [vmem:[%s1658_s4 + $0x108] sm:$0xff] %vm819_vm2, %v788_v48  ;;  %v804_v51 = vsel %vm676_vm10, %v612_v41, %v740_v47  ;;  %v401_v52 = vpop.f32.mrf.mxu2  ;;  %v449_v53 = vpop.f32.mrf.mxu3 }
  0x9d   :  { %869 = vst.msk [vmem:[%s1658_s4 + $0x188] sm:$0xff] %vm819_vm2, %v804_v51  ;;  %vm629_vm11 = vcmp.gt.f32.partialorder %v565_v49, 0.0  ;;  %v693_v54 = vmul.f32 0.01, %v565_v49  ;;  %vm645_vm12 = vcmp.gt.f32.partialorder %v581_v50, 0.0  ;;  %v529_v55 = vmul.f32 %v1263_v4, %v401_v52 }
  0x9e   :  { %v709_v56 = vmul.f32 0.01, %v581_v50  ;;  %v545_v57 = vmul.f32 %v1263_v4, %v449_v53 }
  0x9f   :  { %v757_v58 = vsel %vm629_vm11, %v565_v49, %v693_v54  ;;  %v597_v59 = vadd.f32 %v1268_v5, %v529_v55 }
  0xa0   :  { %822 = vst.msk [vmem:[%s1658_s4 + $0x10] sm:$0xff] %vm819_vm2, %v757_v58  ;;  %v773_v60 = vsel %vm645_vm12, %v581_v50, %v709_v56  ;;  %v613_v61 = vadd.f32 %v1268_v5, %v545_v57  ;;  %v308_v62 = vpop.f32.mrf.mxu0  ;;  %v356_v63 = vpop.f32.mrf.mxu1 }
  0xa1   :  { %838 = vst.msk [vmem:[%s1658_s4 + $0x90] sm:$0xff] %vm819_vm2, %v773_v60  ;;  %vm661_vm13 = vcmp.gt.f32.partialorder %v597_v59, 0.0  ;;  %v725_v0 = vmul.f32 0.01, %v597_v59  ;;  %v498_v1 = vmul.f32 %v1263_v4, %v308_v62  ;;  %v514_v2 = vmul.f32 %v1263_v4, %v356_v63 }
  0xa2   :  { %vm677_vm14 = vcmp.gt.f32.partialorder %v613_v61, 0.0  ;;  %v741_v3 = vmul.f32 0.01, %v613_v61 }
  0xa3   :  { %v789_v6 = vsel %vm661_vm13, %v597_v59, %v725_v0  ;;  %v566_v7 = vadd.f32 %v1268_v5, %v498_v1  ;;  %v582_v8 = vadd.f32 %v1268_v5, %v514_v2 }
  0xa4   :  { %854 = vst.msk [vmem:[%s1658_s4 + $0x110] sm:$0xff] %vm819_vm2, %v789_v6  ;;  %v805_v9 = vsel %vm677_vm14, %v613_v61, %v741_v3  ;;  %v404_v10 = vpop.f32.mrf.mxu2  ;;  %v452_v11 = vpop.f32.mrf.mxu3 }
  0xa5   :  { %870 = vst.msk [vmem:[%s1658_s4 + $0x190] sm:$0xff] %vm819_vm2, %v805_v9  ;;  %vm630_vm15 = vcmp.gt.f32.partialorder %v566_v7, 0.0  ;;  %v694_v12 = vmul.f32 0.01, %v566_v7  ;;  %vm646_vm0 = vcmp.gt.f32.partialorder %v582_v8, 0.0  ;;  %v530_v13 = vmul.f32 %v1263_v4, %v404_v10 }
  0xa6   :  { %v710_v14 = vmul.f32 0.01, %v582_v8  ;;  %v546_v15 = vmul.f32 %v1263_v4, %v452_v11 }
  0xa7   :  { %v758_v16 = vsel %vm630_vm15, %v566_v7, %v694_v12  ;;  %v598_v17 = vadd.f32 %v1268_v5, %v530_v13 }
  0xa8   :  { %823 = vst.msk [vmem:[%s1658_s4 + $0x18] sm:$0xff] %vm819_vm2, %v758_v16  ;;  %v774_v18 = vsel %vm646_vm0, %v582_v8, %v710_v14  ;;  %v614_v19 = vadd.f32 %v1268_v5, %v546_v15  ;;  %v311_v20 = vpop.f32.mrf.mxu0  ;;  %v359_v21 = vpop.f32.mrf.mxu1 }
  0xa9   :  { %839 = vst.msk [vmem:[%s1658_s4 + $0x98] sm:$0xff] %vm819_vm2, %v774_v18  ;;  %vm662_vm1 = vcmp.gt.f32.partialorder %v598_v17, 0.0  ;;  %v726_v22 = vmul.f32 0.01, %v598_v17  ;;  %v499_v23 = vmul.f32 %v1263_v4, %v311_v20  ;;  %v515_v24 = vmul.f32 %v1263_v4, %v359_v21 }
  0xaa   :  { %vm678_vm3 = vcmp.gt.f32.partialorder %v614_v19, 0.0  ;;  %v742_v25 = vmul.f32 0.01, %v614_v19 }
  0xab   :  { %v790_v26 = vsel %vm662_vm1, %v598_v17, %v726_v22  ;;  %v567_v27 = vadd.f32 %v1268_v5, %v499_v23  ;;  %v583_v28 = vadd.f32 %v1268_v5, %v515_v24 }
  0xac   :  { %855 = vst.msk [vmem:[%s1658_s4 + $0x118] sm:$0xff] %vm819_vm2, %v790_v26  ;;  %v806_v29 = vsel %vm678_vm3, %v614_v19, %v742_v25  ;;  %v407_v30 = vpop.f32.mrf.mxu2  ;;  %v455_v31 = vpop.f32.mrf.mxu3 }
  0xad   :  { %871 = vst.msk [vmem:[%s1658_s4 + $0x198] sm:$0xff] %vm819_vm2, %v806_v29  ;;  %vm631_vm4 = vcmp.gt.f32.partialorder %v567_v27, 0.0  ;;  %v695_v32 = vmul.f32 0.01, %v567_v27  ;;  %vm647_vm5 = vcmp.gt.f32.partialorder %v583_v28, 0.0  ;;  %v531_v33 = vmul.f32 %v1263_v4, %v407_v30 }
  0xae   :  { %v711_v34 = vmul.f32 0.01, %v583_v28  ;;  %v547_v35 = vmul.f32 %v1263_v4, %v455_v31 }
  0xaf   :  { %v759_v36 = vsel %vm631_vm4, %v567_v27, %v695_v32  ;;  %v599_v37 = vadd.f32 %v1268_v5, %v531_v33 }
  0xb0   :  { %824 = vst.msk [vmem:[%s1658_s4 + $0x20] sm:$0xff] %vm819_vm2, %v759_v36  ;;  %v775_v38 = vsel %vm647_vm5, %v583_v28, %v711_v34  ;;  %v615_v39 = vadd.f32 %v1268_v5, %v547_v35  ;;  %v314_v40 = vpop.f32.mrf.mxu0  ;;  %v362_v41 = vpop.f32.mrf.mxu1 }
  0xb1   :  { %840 = vst.msk [vmem:[%s1658_s4 + $0xa0] sm:$0xff] %vm819_vm2, %v775_v38  ;;  %vm663_vm6 = vcmp.gt.f32.partialorder %v599_v37, 0.0  ;;  %v727_v42 = vmul.f32 0.01, %v599_v37  ;;  %v500_v43 = vmul.f32 %v1263_v4, %v314_v40  ;;  %v516_v44 = vmul.f32 %v1263_v4, %v362_v41 }
  0xb2   :  { %vm679_vm7 = vcmp.gt.f32.partialorder %v615_v39, 0.0  ;;  %v743_v45 = vmul.f32 0.01, %v615_v39 }
  0xb3   :  { %v791_v46 = vsel %vm663_vm6, %v599_v37, %v727_v42  ;;  %v568_v47 = vadd.f32 %v1268_v5, %v500_v43  ;;  %v584_v48 = vadd.f32 %v1268_v5, %v516_v44 }
  0xb4   :  { %856 = vst.msk [vmem:[%s1658_s4 + $0x120] sm:$0xff] %vm819_vm2, %v791_v46  ;;  %v807_v49 = vsel %vm679_vm7, %v615_v39, %v743_v45  ;;  %v410_v50 = vpop.f32.mrf.mxu2  ;;  %v458_v51 = vpop.f32.mrf.mxu3 }
  0xb5   :  { %872 = vst.msk [vmem:[%s1658_s4 + $0x1a0] sm:$0xff] %vm819_vm2, %v807_v49  ;;  %vm632_vm8 = vcmp.gt.f32.partialorder %v568_v47, 0.0  ;;  %v696_v52 = vmul.f32 0.01, %v568_v47  ;;  %vm648_vm9 = vcmp.gt.f32.partialorder %v584_v48, 0.0  ;;  %v532_v53 = vmul.f32 %v1263_v4, %v410_v50 }
  0xb6   :  { %v712_v54 = vmul.f32 0.01, %v584_v48  ;;  %v548_v55 = vmul.f32 %v1263_v4, %v458_v51 }
  0xb7   :  { %v760_v56 = vsel %vm632_vm8, %v568_v47, %v696_v52  ;;  %v600_v57 = vadd.f32 %v1268_v5, %v532_v53 }
  0xb8   :  { %825 = vst.msk [vmem:[%s1658_s4 + $0x28] sm:$0xff] %vm819_vm2, %v760_v56  ;;  %v776_v58 = vsel %vm648_vm9, %v584_v48, %v712_v54  ;;  %v616_v59 = vadd.f32 %v1268_v5, %v548_v55  ;;  %v317_v60 = vpop.f32.mrf.mxu0  ;;  %v365_v61 = vpop.f32.mrf.mxu1 }
  0xb9   :  { %841 = vst.msk [vmem:[%s1658_s4 + $0xa8] sm:$0xff] %vm819_vm2, %v776_v58  ;;  %vm664_vm10 = vcmp.gt.f32.partialorder %v600_v57, 0.0  ;;  %v728_v62 = vmul.f32 0.01, %v600_v57  ;;  %v501_v63 = vmul.f32 %v1263_v4, %v317_v60  ;;  %v517_v0 = vmul.f32 %v1263_v4, %v365_v61 }
  0xba   :  { %vm680_vm11 = vcmp.gt.f32.partialorder %v616_v59, 0.0  ;;  %v744_v1 = vmul.f32 0.01, %v616_v59 }
  0xbb   :  { %v792_v2 = vsel %vm664_vm10, %v600_v57, %v728_v62  ;;  %v569_v3 = vadd.f32 %v1268_v5, %v501_v63  ;;  %v585_v6 = vadd.f32 %v1268_v5, %v517_v0 }
  0xbc   :  { %857 = vst.msk [vmem:[%s1658_s4 + $0x128] sm:$0xff] %vm819_vm2, %v792_v2  ;;  %v808_v7 = vsel %vm680_vm11, %v616_v59, %v744_v1  ;;  %v413_v8 = vpop.f32.mrf.mxu2  ;;  %v461_v9 = vpop.f32.mrf.mxu3 }
  0xbd   :  { %873 = vst.msk [vmem:[%s1658_s4 + $0x1a8] sm:$0xff] %vm819_vm2, %v808_v7  ;;  %vm633_vm12 = vcmp.gt.f32.partialorder %v569_v3, 0.0  ;;  %v697_v10 = vmul.f32 0.01, %v569_v3  ;;  %vm649_vm13 = vcmp.gt.f32.partialorder %v585_v6, 0.0  ;;  %v533_v11 = vmul.f32 %v1263_v4, %v413_v8 }
  0xbe   :  { %v713_v12 = vmul.f32 0.01, %v585_v6  ;;  %v549_v13 = vmul.f32 %v1263_v4, %v461_v9 }
  0xbf   :  { %v761_v14 = vsel %vm633_vm12, %v569_v3, %v697_v10  ;;  %v601_v15 = vadd.f32 %v1268_v5, %v533_v11 }
  0xc0   :  { %826 = vst.msk [vmem:[%s1658_s4 + $0x30] sm:$0xff] %vm819_vm2, %v761_v14  ;;  %v777_v16 = vsel %vm649_vm13, %v585_v6, %v713_v12  ;;  %v617_v17 = vadd.f32 %v1268_v5, %v549_v13  ;;  %v320_v18 = vpop.f32.mrf.mxu0  ;;  %v368_v19 = vpop.f32.mrf.mxu1 }
  0xc1   :  { %842 = vst.msk [vmem:[%s1658_s4 + $0xb0] sm:$0xff] %vm819_vm2, %v777_v16  ;;  %vm665_vm14 = vcmp.gt.f32.partialorder %v601_v15, 0.0  ;;  %v729_v20 = vmul.f32 0.01, %v601_v15  ;;  %v502_v21 = vmul.f32 %v1263_v4, %v320_v18  ;;  %v518_v22 = vmul.f32 %v1263_v4, %v368_v19 }
  0xc2   :  { %vm681_vm15 = vcmp.gt.f32.partialorder %v617_v17, 0.0  ;;  %v745_v23 = vmul.f32 0.01, %v617_v17 }
  0xc3   :  { %v793_v24 = vsel %vm665_vm14, %v601_v15, %v729_v20  ;;  %v570_v25 = vadd.f32 %v1268_v5, %v502_v21  ;;  %v586_v26 = vadd.f32 %v1268_v5, %v518_v22 }
  0xc4   :  { %858 = vst.msk [vmem:[%s1658_s4 + $0x130] sm:$0xff] %vm819_vm2, %v793_v24  ;;  %v809_v27 = vsel %vm681_vm15, %v617_v17, %v745_v23  ;;  %v416_v28 = vpop.f32.mrf.mxu2  ;;  %v464_v29 = vpop.f32.mrf.mxu3 }
  0xc5   :  { %874 = vst.msk [vmem:[%s1658_s4 + $0x1b0] sm:$0xff] %vm819_vm2, %v809_v27  ;;  %vm634_vm0 = vcmp.gt.f32.partialorder %v570_v25, 0.0  ;;  %v698_v30 = vmul.f32 0.01, %v570_v25  ;;  %vm650_vm1 = vcmp.gt.f32.partialorder %v586_v26, 0.0  ;;  %v534_v31 = vmul.f32 %v1263_v4, %v416_v28 }
  0xc6   :  { %v714_v32 = vmul.f32 0.01, %v586_v26  ;;  %v550_v33 = vmul.f32 %v1263_v4, %v464_v29 }
  0xc7   :  { %v762_v34 = vsel %vm634_vm0, %v570_v25, %v698_v30  ;;  %v602_v35 = vadd.f32 %v1268_v5, %v534_v31 }
  0xc8   :  { %827 = vst.msk [vmem:[%s1658_s4 + $0x38] sm:$0xff] %vm819_vm2, %v762_v34  ;;  %v778_v36 = vsel %vm650_vm1, %v586_v26, %v714_v32  ;;  %v618_v37 = vadd.f32 %v1268_v5, %v550_v33  ;;  %v323_v38 = vpop.f32.mrf.mxu0  ;;  %v371_v39 = vpop.f32.mrf.mxu1 }
  0xc9   :  { %843 = vst.msk [vmem:[%s1658_s4 + $0xb8] sm:$0xff] %vm819_vm2, %v778_v36  ;;  %vm666_vm3 = vcmp.gt.f32.partialorder %v602_v35, 0.0  ;;  %v730_v40 = vmul.f32 0.01, %v602_v35  ;;  %v503_v41 = vmul.f32 %v1263_v4, %v323_v38  ;;  %v519_v42 = vmul.f32 %v1263_v4, %v371_v39 }
  0xca   :  { %vm682_vm4 = vcmp.gt.f32.partialorder %v618_v37, 0.0  ;;  %v746_v43 = vmul.f32 0.01, %v618_v37 }
  0xcb   :  { %v794_v44 = vsel %vm666_vm3, %v602_v35, %v730_v40  ;;  %v571_v45 = vadd.f32 %v1268_v5, %v503_v41  ;;  %v587_v46 = vadd.f32 %v1268_v5, %v519_v42 }
  0xcc   :  { %859 = vst.msk [vmem:[%s1658_s4 + $0x138] sm:$0xff] %vm819_vm2, %v794_v44  ;;  %v810_v47 = vsel %vm682_vm4, %v618_v37, %v746_v43  ;;  %v419_v48 = vpop.f32.mrf.mxu2  ;;  %v467_v49 = vpop.f32.mrf.mxu3 }
  0xcd   :  { %875 = vst.msk [vmem:[%s1658_s4 + $0x1b8] sm:$0xff] %vm819_vm2, %v810_v47  ;;  %vm635_vm5 = vcmp.gt.f32.partialorder %v571_v45, 0.0  ;;  %v699_v50 = vmul.f32 0.01, %v571_v45  ;;  %vm651_vm6 = vcmp.gt.f32.partialorder %v587_v46, 0.0  ;;  %v535_v51 = vmul.f32 %v1263_v4, %v419_v48 }
  0xce   :  { %v715_v52 = vmul.f32 0.01, %v587_v46  ;;  %v551_v53 = vmul.f32 %v1263_v4, %v467_v49 }
  0xcf   :  { %v763_v54 = vsel %vm635_vm5, %v571_v45, %v699_v50  ;;  %v603_v55 = vadd.f32 %v1268_v5, %v535_v51 }
  0xd0   :  { %828 = vst.msk [vmem:[%s1658_s4 + $0x40] sm:$0xff] %vm819_vm2, %v763_v54  ;;  %v779_v56 = vsel %vm651_vm6, %v587_v46, %v715_v52  ;;  %v619_v57 = vadd.f32 %v1268_v5, %v551_v53  ;;  %v326_v58 = vpop.f32.mrf.mxu0  ;;  %v374_v59 = vpop.f32.mrf.mxu1 }
  0xd1   :  { %844 = vst.msk [vmem:[%s1658_s4 + $0xc0] sm:$0xff] %vm819_vm2, %v779_v56  ;;  %vm667_vm7 = vcmp.gt.f32.partialorder %v603_v55, 0.0  ;;  %v731_v60 = vmul.f32 0.01, %v603_v55  ;;  %v504_v61 = vmul.f32 %v1263_v4, %v326_v58  ;;  %v520_v62 = vmul.f32 %v1263_v4, %v374_v59 }
  0xd2   :  { %vm683_vm8 = vcmp.gt.f32.partialorder %v619_v57, 0.0  ;;  %v747_v63 = vmul.f32 0.01, %v619_v57 }
  0xd3   :  { %v795_v0 = vsel %vm667_vm7, %v603_v55, %v731_v60  ;;  %v572_v1 = vadd.f32 %v1268_v5, %v504_v61  ;;  %v588_v2 = vadd.f32 %v1268_v5, %v520_v62 }
  0xd4   :  { %860 = vst.msk [vmem:[%s1658_s4 + $0x140] sm:$0xff] %vm819_vm2, %v795_v0  ;;  %v811_v3 = vsel %vm683_vm8, %v619_v57, %v747_v63  ;;  %v422_v6 = vpop.f32.mrf.mxu2  ;;  %v470_v7 = vpop.f32.mrf.mxu3 }
  0xd5   :  { %876 = vst.msk [vmem:[%s1658_s4 + $0x1c0] sm:$0xff] %vm819_vm2, %v811_v3  ;;  %vm636_vm9 = vcmp.gt.f32.partialorder %v572_v1, 0.0  ;;  %v700_v8 = vmul.f32 0.01, %v572_v1  ;;  %vm652_vm10 = vcmp.gt.f32.partialorder %v588_v2, 0.0  ;;  %v536_v9 = vmul.f32 %v1263_v4, %v422_v6 }
  0xd6   :  { %v716_v10 = vmul.f32 0.01, %v588_v2  ;;  %v552_v11 = vmul.f32 %v1263_v4, %v470_v7 }
  0xd7   :  { %v764_v12 = vsel %vm636_vm9, %v572_v1, %v700_v8  ;;  %v604_v13 = vadd.f32 %v1268_v5, %v536_v9 }
  0xd8   :  { %829 = vst.msk [vmem:[%s1658_s4 + $0x48] sm:$0xff] %vm819_vm2, %v764_v12  ;;  %v780_v14 = vsel %vm652_vm10, %v588_v2, %v716_v10  ;;  %v620_v15 = vadd.f32 %v1268_v5, %v552_v11  ;;  %v329_v16 = vpop.f32.mrf.mxu0  ;;  %v377_v17 = vpop.f32.mrf.mxu1 }
  0xd9   :  { %845 = vst.msk [vmem:[%s1658_s4 + $0xc8] sm:$0xff] %vm819_vm2, %v780_v14  ;;  %vm668_vm11 = vcmp.gt.f32.partialorder %v604_v13, 0.0  ;;  %v732_v18 = vmul.f32 0.01, %v604_v13  ;;  %v505_v19 = vmul.f32 %v1263_v4, %v329_v16  ;;  %v521_v20 = vmul.f32 %v1263_v4, %v377_v17 }
  0xda   :  { %vm684_vm12 = vcmp.gt.f32.partialorder %v620_v15, 0.0  ;;  %v748_v21 = vmul.f32 0.01, %v620_v15 }
  0xdb   :  { %v796_v22 = vsel %vm668_vm11, %v604_v13, %v732_v18  ;;  %v573_v23 = vadd.f32 %v1268_v5, %v505_v19  ;;  %v589_v24 = vadd.f32 %v1268_v5, %v521_v20 }
  0xdc   :  { %861 = vst.msk [vmem:[%s1658_s4 + $0x148] sm:$0xff] %vm819_vm2, %v796_v22  ;;  %v812_v25 = vsel %vm684_vm12, %v620_v15, %v748_v21  ;;  %v425_v26 = vpop.f32.mrf.mxu2  ;;  %v473_v27 = vpop.f32.mrf.mxu3 }
  0xdd   :  { %877 = vst.msk [vmem:[%s1658_s4 + $0x1c8] sm:$0xff] %vm819_vm2, %v812_v25  ;;  %vm637_vm13 = vcmp.gt.f32.partialorder %v573_v23, 0.0  ;;  %v701_v28 = vmul.f32 0.01, %v573_v23  ;;  %vm653_vm14 = vcmp.gt.f32.partialorder %v589_v24, 0.0  ;;  %v537_v29 = vmul.f32 %v1263_v4, %v425_v26 }
  0xde   :  { %v717_v30 = vmul.f32 0.01, %v589_v24  ;;  %v553_v31 = vmul.f32 %v1263_v4, %v473_v27 }
  0xdf   :  { %v765_v32 = vsel %vm637_vm13, %v573_v23, %v701_v28  ;;  %v605_v33 = vadd.f32 %v1268_v5, %v537_v29 }
  0xe0   :  { %830 = vst.msk [vmem:[%s1658_s4 + $0x50] sm:$0xff] %vm819_vm2, %v765_v32  ;;  %v781_v34 = vsel %vm653_vm14, %v589_v24, %v717_v30  ;;  %v621_v35 = vadd.f32 %v1268_v5, %v553_v31  ;;  %v332_v36 = vpop.f32.mrf.mxu0  ;;  %v380_v37 = vpop.f32.mrf.mxu1 }
  0xe1   :  { %846 = vst.msk [vmem:[%s1658_s4 + $0xd0] sm:$0xff] %vm819_vm2, %v781_v34  ;;  %vm669_vm15 = vcmp.gt.f32.partialorder %v605_v33, 0.0  ;;  %v733_v38 = vmul.f32 0.01, %v605_v33  ;;  %v506_v39 = vmul.f32 %v1263_v4, %v332_v36  ;;  %v522_v40 = vmul.f32 %v1263_v4, %v380_v37 }
  0xe2   :  { %vm685_vm0 = vcmp.gt.f32.partialorder %v621_v35, 0.0  ;;  %v749_v41 = vmul.f32 0.01, %v621_v35 }
  0xe3   :  { %v797_v42 = vsel %vm669_vm15, %v605_v33, %v733_v38  ;;  %v574_v43 = vadd.f32 %v1268_v5, %v506_v39  ;;  %v590_v44 = vadd.f32 %v1268_v5, %v522_v40 }
  0xe4   :  { %862 = vst.msk [vmem:[%s1658_s4 + $0x150] sm:$0xff] %vm819_vm2, %v797_v42  ;;  %v813_v45 = vsel %vm685_vm0, %v621_v35, %v749_v41  ;;  %v428_v46 = vpop.f32.mrf.mxu2  ;;  %v476_v47 = vpop.f32.mrf.mxu3 }
  0xe5   :  { %878 = vst.msk [vmem:[%s1658_s4 + $0x1d0] sm:$0xff] %vm819_vm2, %v813_v45  ;;  %vm638_vm1 = vcmp.gt.f32.partialorder %v574_v43, 0.0  ;;  %v702_v48 = vmul.f32 0.01, %v574_v43  ;;  %vm654_vm3 = vcmp.gt.f32.partialorder %v590_v44, 0.0  ;;  %v538_v49 = vmul.f32 %v1263_v4, %v428_v46 }
  0xe6   :  { %v718_v50 = vmul.f32 0.01, %v590_v44  ;;  %v554_v51 = vmul.f32 %v1263_v4, %v476_v47 }
  0xe7   :  { %v766_v52 = vsel %vm638_vm1, %v574_v43, %v702_v48  ;;  %v606_v53 = vadd.f32 %v1268_v5, %v538_v49 }
  0xe8   :  { %831 = vst.msk [vmem:[%s1658_s4 + $0x58] sm:$0xff] %vm819_vm2, %v766_v52  ;;  %v782_v54 = vsel %vm654_vm3, %v590_v44, %v718_v50  ;;  %v622_v55 = vadd.f32 %v1268_v5, %v554_v51  ;;  %v335_v56 = vpop.f32.mrf.mxu0  ;;  %v383_v57 = vpop.f32.mrf.mxu1 }
  0xe9   :  { %847 = vst.msk [vmem:[%s1658_s4 + $0xd8] sm:$0xff] %vm819_vm2, %v782_v54  ;;  %vm670_vm4 = vcmp.gt.f32.partialorder %v606_v53, 0.0  ;;  %v734_v58 = vmul.f32 0.01, %v606_v53  ;;  %v507_v59 = vmul.f32 %v1263_v4, %v335_v56  ;;  %v523_v60 = vmul.f32 %v1263_v4, %v383_v57 }
  0xea   :  { %vm686_vm5 = vcmp.gt.f32.partialorder %v622_v55, 0.0  ;;  %v750_v61 = vmul.f32 0.01, %v622_v55 }
  0xeb   :  { %v798_v62 = vsel %vm670_vm4, %v606_v53, %v734_v58  ;;  %v575_v63 = vadd.f32 %v1268_v5, %v507_v59  ;;  %v591_v0 = vadd.f32 %v1268_v5, %v523_v60 }
  0xec   :  { %863 = vst.msk [vmem:[%s1658_s4 + $0x158] sm:$0xff] %vm819_vm2, %v798_v62  ;;  %v814_v1 = vsel %vm686_vm5, %v622_v55, %v750_v61  ;;  %v431_v2 = vpop.f32.mrf.mxu2  ;;  %v479_v3 = vpop.f32.mrf.mxu3 }
  0xed   :  { %879 = vst.msk [vmem:[%s1658_s4 + $0x1d8] sm:$0xff] %vm819_vm2, %v814_v1  ;;  %vm639_vm6 = vcmp.gt.f32.partialorder %v575_v63, 0.0  ;;  %v703_v6 = vmul.f32 0.01, %v575_v63  ;;  %vm655_vm7 = vcmp.gt.f32.partialorder %v591_v0, 0.0  ;;  %v539_v7 = vmul.f32 %v1263_v4, %v431_v2 }
  0xee   :  { %v719_v8 = vmul.f32 0.01, %v591_v0  ;;  %v555_v9 = vmul.f32 %v1263_v4, %v479_v3 }
  0xef   :  { %v767_v10 = vsel %vm639_vm6, %v575_v63, %v703_v6  ;;  %v607_v11 = vadd.f32 %v1268_v5, %v539_v7 }
  0xf0   :  { %832 = vst.msk [vmem:[%s1658_s4 + $0x60] sm:$0xff] %vm819_vm2, %v767_v10  ;;  %v783_v12 = vsel %vm655_vm7, %v591_v0, %v719_v8  ;;  %v623_v13 = vadd.f32 %v1268_v5, %v555_v9  ;;  %v338_v14 = vpop.f32.mrf.mxu0  ;;  %v386_v15 = vpop.f32.mrf.mxu1 }
  0xf1   :  { %848 = vst.msk [vmem:[%s1658_s4 + $0xe0] sm:$0xff] %vm819_vm2, %v783_v12  ;;  %vm671_vm8 = vcmp.gt.f32.partialorder %v607_v11, 0.0  ;;  %v735_v16 = vmul.f32 0.01, %v607_v11  ;;  %v508_v17 = vmul.f32 %v1263_v4, %v338_v14  ;;  %v524_v18 = vmul.f32 %v1263_v4, %v386_v15 }
  0xf2   :  { %vm687_vm9 = vcmp.gt.f32.partialorder %v623_v13, 0.0  ;;  %v751_v19 = vmul.f32 0.01, %v623_v13 }
  0xf3   :  { %v799_v20 = vsel %vm671_vm8, %v607_v11, %v735_v16  ;;  %v576_v21 = vadd.f32 %v1268_v5, %v508_v17  ;;  %v592_v22 = vadd.f32 %v1268_v5, %v524_v18 }
  0xf4   :  { %864 = vst.msk [vmem:[%s1658_s4 + $0x160] sm:$0xff] %vm819_vm2, %v799_v20  ;;  %v815_v23 = vsel %vm687_vm9, %v623_v13, %v751_v19  ;;  %v434_v24 = vpop.f32.mrf.mxu2  ;;  %v482_v25 = vpop.f32.mrf.mxu3 }
  0xf5   :  { %880 = vst.msk [vmem:[%s1658_s4 + $0x1e0] sm:$0xff] %vm819_vm2, %v815_v23  ;;  %vm640_vm10 = vcmp.gt.f32.partialorder %v576_v21, 0.0  ;;  %v704_v26 = vmul.f32 0.01, %v576_v21  ;;  %vm656_vm11 = vcmp.gt.f32.partialorder %v592_v22, 0.0  ;;  %v540_v27 = vmul.f32 %v1263_v4, %v434_v24 }
  0xf6   :  { %v720_v28 = vmul.f32 0.01, %v592_v22  ;;  %v556_v29 = vmul.f32 %v1263_v4, %v482_v25 }
  0xf7   :  { %v768_v30 = vsel %vm640_vm10, %v576_v21, %v704_v26  ;;  %v608_v31 = vadd.f32 %v1268_v5, %v540_v27 }
  0xf8   :  { %833 = vst.msk [vmem:[%s1658_s4 + $0x68] sm:$0xff] %vm819_vm2, %v768_v30  ;;  %v784_v32 = vsel %vm656_vm11, %v592_v22, %v720_v28  ;;  %v624_v33 = vadd.f32 %v1268_v5, %v556_v29  ;;  %v341_v34 = vpop.f32.mrf.mxu0  ;;  %v389_v35 = vpop.f32.mrf.mxu1 }
  0xf9   :  { %849 = vst.msk [vmem:[%s1658_s4 + $0xe8] sm:$0xff] %vm819_vm2, %v784_v32  ;;  %vm672_vm12 = vcmp.gt.f32.partialorder %v608_v31, 0.0  ;;  %v736_v36 = vmul.f32 0.01, %v608_v31  ;;  %v509_v37 = vmul.f32 %v1263_v4, %v341_v34  ;;  %v525_v38 = vmul.f32 %v1263_v4, %v389_v35 }
  0xfa   :  { %vm688_vm13 = vcmp.gt.f32.partialorder %v624_v33, 0.0  ;;  %v752_v39 = vmul.f32 0.01, %v624_v33 }
  0xfb   :  { %v800_v40 = vsel %vm672_vm12, %v608_v31, %v736_v36  ;;  %v577_v41 = vadd.f32 %v1268_v5, %v509_v37  ;;  %v593_v42 = vadd.f32 %v1268_v5, %v525_v38 }
  0xfc   :  { %865 = vst.msk [vmem:[%s1658_s4 + $0x168] sm:$0xff] %vm819_vm2, %v800_v40  ;;  %v816_v43 = vsel %vm688_vm13, %v624_v33, %v752_v39  ;;  %v437_v44 = vpop.f32.mrf.mxu2  ;;  %v485_v45 = vpop.f32.mrf.mxu3 }
  0xfd   :  { %881 = vst.msk [vmem:[%s1658_s4 + $0x1e8] sm:$0xff] %vm819_vm2, %v816_v43  ;;  %vm641_vm14 = vcmp.gt.f32.partialorder %v577_v41, 0.0  ;;  %v705_v46 = vmul.f32 0.01, %v577_v41  ;;  %vm657_vm15 = vcmp.gt.f32.partialorder %v593_v42, 0.0  ;;  %v541_v47 = vmul.f32 %v1263_v4, %v437_v44 }
  0xfe   :  { %v721_v48 = vmul.f32 0.01, %v593_v42  ;;  %v557_v49 = vmul.f32 %v1263_v4, %v485_v45 }
  0xff   :  { %v769_v50 = vsel %vm641_vm14, %v577_v41, %v705_v46  ;;  %v609_v51 = vadd.f32 %v1268_v5, %v541_v47 }
 0x100   :  { %834 = vst.msk [vmem:[%s1658_s4 + $0x70] sm:$0xff] %vm819_vm2, %v769_v50  ;;  %v785_v52 = vsel %vm657_vm15, %v593_v42, %v721_v48  ;;  %v625_v53 = vadd.f32 %v1268_v5, %v557_v49  ;;  %v344_v54 = vpop.f32.mrf.mxu0  ;;  %v392_v55 = vpop.f32.mrf.mxu1 }
 0x101   :  { %850 = vst.msk [vmem:[%s1658_s4 + $0xf0] sm:$0xff] %vm819_vm2, %v785_v52  ;;  %vm673_vm0 = vcmp.gt.f32.partialorder %v609_v51, 0.0  ;;  %v737_v56 = vmul.f32 0.01, %v609_v51  ;;  %v510_v57 = vmul.f32 %v1263_v4, %v344_v54  ;;  %v526_v58 = vmul.f32 %v1263_v4, %v392_v55 }
 0x102   :  { %vm689_vm1 = vcmp.gt.f32.partialorder %v625_v53, 0.0  ;;  %v753_v59 = vmul.f32 0.01, %v625_v53 }
 0x103   :  { %v801_v60 = vsel %vm673_vm0, %v609_v51, %v737_v56  ;;  %v578_v61 = vadd.f32 %v1268_v5, %v510_v57  ;;  %v594_v62 = vadd.f32 %v1268_v5, %v526_v58 }
 0x104   :  { %866 = vst.msk [vmem:[%s1658_s4 + $0x170] sm:$0xff] %vm819_vm2, %v801_v60  ;;  %v817_v63 = vsel %vm689_vm1, %v625_v53, %v753_v59  ;;  %v440_v0 = vpop.f32.mrf.mxu2  ;;  %v488_v1 = vpop.f32.mrf.mxu3 }
 0x105   :  { %882 = vst.msk [vmem:[%s1658_s4 + $0x1f0] sm:$0xff] %vm819_vm2, %v817_v63  ;;  %vm642_vm3 = vcmp.gt.f32.partialorder %v578_v61, 0.0  ;;  %v706_v2 = vmul.f32 0.01, %v578_v61  ;;  %vm658_vm4 = vcmp.gt.f32.partialorder %v594_v62, 0.0  ;;  %v542_v3 = vmul.f32 %v1263_v4, %v440_v0 }
 0x106   :  { %v722_v6 = vmul.f32 0.01, %v594_v62  ;;  %v558_v7 = vmul.f32 %v1263_v4, %v488_v1 }
 0x107   :  { %v770_v8 = vsel %vm642_vm3, %v578_v61, %v706_v2  ;;  %v610_v9 = vadd.f32 %v1268_v5, %v542_v3 }
 0x108   :  { %835 = vst.msk [vmem:[%s1658_s4 + $0x78] sm:$0xff] %vm819_vm2, %v770_v8  ;;  %v786_v10 = vsel %vm658_vm4, %v594_v62, %v722_v6  ;;  %v626_v11 = vadd.f32 %v1268_v5, %v558_v7 }
 0x109   :  { %851 = vst.msk [vmem:[%s1658_s4 + $0xf8] sm:$0xff] %vm819_vm2, %v786_v10  ;;  %vm674_vm5 = vcmp.gt.f32.partialorder %v610_v9, 0.0  ;;  %v738_v12 = vmul.f32 0.01, %v610_v9 }
 0x10a   :  { %vm690_vm6 = vcmp.gt.f32.partialorder %v626_v11, 0.0  ;;  %v754_v4 = vmul.f32 0.01, %v626_v11 }
 0x10b   :  { %v802_v13 = vsel %vm674_vm5, %v610_v9, %v738_v12 }
 0x10c   :  { %867 = vst.msk [vmem:[%s1658_s4 + $0x178] sm:$0xff] %vm819_vm2, %v802_v13  ;;  %v818_v14 = vsel %vm690_vm6, %v626_v11, %v754_v4 }
 0x10d   :  { %883 = vst.msk [vmem:[%s1658_s4 + $0x1f8] sm:$0xff] %vm819_vm2, %v818_v14 }

</bundles_post_ra>
